<compile_context>
chip_gen: v7x
topology: tpu7x:2x2x1
jax: 0.10.0
libtpu: 0.0.40
codegen_flags: <defaults>
</compile_context>

<pallas_src>
import jax
import jax.numpy as jnp
from jax import lax
from jax.experimental import pallas as pl
from jax.experimental.pallas import tpu as pltpu


def _byol_loss_kernel(x_ref, y_ref, o_ref):
    # Whole (block_rows, D) tile is resident in VMEM.
    x = x_ref[...].astype(jnp.float32)
    y = y_ref[...].astype(jnp.float32)

    xsq = jnp.sum(x * x, axis=-1, keepdims=True)   # (rows, 1)
    ysq = jnp.sum(y * y, axis=-1, keepdims=True)   # (rows, 1)
    dot = jnp.sum(x * y, axis=-1, keepdims=True)   # (rows, 1)

    # F.normalize clamps each norm at eps=1e-12; clamping the squared norm at
    # eps^2 is the same thing, and rsqrt runs on the (otherwise idle) EUP.
    eps_sq = jnp.float32(1e-24)
    inv_xn = lax.rsqrt(jnp.maximum(xsq, eps_sq))
    inv_yn = lax.rsqrt(jnp.maximum(ysq, eps_sq))

    cos = dot * inv_xn * inv_yn
    o_ref[...] = (2.0 - 2.0 * cos).astype(o_ref.dtype)


def byol_loss(x, y, *, block_rows=None, target_tile_bytes=2 * 1024 * 1024):
    """BYOL loss.  x, y: (..., D) arrays (any leading dims). Returns float32 (...)."""
    assert x.shape == y.shape, "x and y must have matching shapes"
    assert y.dtype == x.dtype, "x and y must have matching dtypes"
    orig_lead = x.shape[:-1]
    D = x.shape[-1]

    x2 = x.reshape(-1, D)
    y2 = y.reshape(-1, D)
    B = x2.shape[0]

    itemsize = jnp.dtype(x.dtype).itemsize
    # Sublane packing: 8 rows for 32-bit, 16 for 16-bit, 32 for 8-bit dtypes.
    row_align = 8 * max(1, 4 // itemsize)

    if block_rows is None:
        # ~target_tile_bytes per input tile keeps 2 inputs x 2 pipeline buffers
        # well under the scoped VMEM limit on v5e/v6e/v7x while staying near
        # the HBM roofline.
        rows_budget = max(1, target_tile_bytes // (D * itemsize))
        block_rows = min(rows_budget, B)
        # Prefer >= 2 grid steps (pipelining everywhere, megacore on v7x).
        if B > row_align:
            block_rows = min(block_rows, -(-B // 2))
        block_rows = ((block_rows + row_align - 1) // row_align) * row_align
    assert block_rows % row_align == 0, (
        f"block_rows must be a multiple of {row_align} for dtype {x.dtype}")

    num_blocks = int(pl.cdiv(B, block_rows))
    b_pad = num_blocks * block_rows
    if b_pad != B:
        # Zero padding: padded rows give a finite loss (2.0) and are dropped.
        pad = b_pad - B
        x2 = jnp.pad(x2, ((0, pad), (0, 0)))
        y2 = jnp.pad(y2, ((0, pad), (0, 0)))

    out = pl.pallas_call(
        _byol_loss_kernel,
        out_shape=jax.ShapeDtypeStruct((b_pad, 1), jnp.float32),
        grid_spec=pltpu.PrefetchScalarGridSpec(
            num_scalar_prefetch=0,
            grid=(num_blocks,),
            in_specs=[
                pl.BlockSpec((block_rows, D), lambda i: (i, 0)),
                pl.BlockSpec((block_rows, D), lambda i: (i, 0)),
            ],
            out_specs=pl.BlockSpec((block_rows, 1), lambda i: (i, 0)),
        ),
        compiler_params=pltpu.CompilerParams(
            dimension_semantics=("parallel",),
            # Explicit, generation-safe scoped-VMEM budget (<= physical on all
            # of v5e/v6e/v7x); our tiles need far less than this anyway.
            vmem_limit_bytes=32 * 1024 * 1024,
        ),
    )(x2, y2)

    loss = out[:B, 0]            # drop padded rows; (B,)
    return loss.reshape(orig_lead)


def _byol_loss_ref(x, y):
    # Pure-JAX reference mirroring the PyTorch module (f32 math).
    eps = 1e-12
    x = x.astype(jnp.float32)
    y = y.astype(jnp.float32)
    xn = x / jnp.maximum(jnp.linalg.norm(x, axis=-1, keepdims=True), eps)
    yn = y / jnp.maximum(jnp.linalg.norm(y, axis=-1, keepdims=True), eps)
    return 2.0 - 2.0 * jnp.sum(xn * yn, axis=-1)


if __name__ == "__main__":
    k0, k1, k2, k3 = jax.random.split(jax.random.PRNGKey(0), 4)

    # Test 1: small f32 inputs matching the module's typical (batch, feature) use.
    B, D = 8, 32
    x = jax.random.normal(k0, (B, D), dtype=jnp.float32)
    y = jax.random.normal(k1, (B, D), dtype=jnp.float32)
    loss = byol_loss(x, y)
    jax.block_until_ready(loss)
    ref = _byol_loss_ref(x, y)
    assert loss.shape == (B,), loss.shape
    assert jnp.allclose(loss, ref, atol=1e-5, rtol=1e-5), (loss, ref)

    # Test 2: ragged batch + bf16 inputs (exercises padding, multi-step grid,
    # and the narrow-dtype HBM path; kernel math stays f32).
    B2, D2 = 50, 256
    x2 = jax.random.normal(k2, (B2, D2), dtype=jnp.float32).astype(jnp.bfloat16)
    y2 = jax.random.normal(k3, (B2, D2), dtype=jnp.float32).astype(jnp.bfloat16)
    loss2 = byol_loss(x2, y2)
    jax.block_until_ready(loss2)
    ref2 = _byol_loss_ref(x2, y2)
    assert loss2.shape == (B2,), loss2.shape
    assert jnp.allclose(loss2, ref2, atol=1e-5, rtol=1e-5), (loss2, ref2)

    print("KERNEL_OK")
</pallas_src>

<mosaic_0001>
module attributes {stable_mosaic.version = 11 : i64} {
  func.func @_byol_loss_kernel(%arg0: i32, %arg1: memref<8x32xf32, #tpu.memory_space<vmem>>, %arg2: memref<8x32xf32, #tpu.memory_space<vmem>>, %arg3: memref<8x1xf32, #tpu.memory_space<vmem>>) attributes {dimension_semantics = [#tpu.dimension_semantics<parallel>], iteration_bounds = array<i64: 1>, scalar_prefetch = 0 : i64, scratch_operands = 0 : i64, tpu.core_type = #tpu.core_type<tc>, window_params = [{transform_indices = @transform_0, window_bounds = array<i64: 8, 32>}, {transform_indices = @transform_1, window_bounds = array<i64: 8, 32>}, {transform_indices = @transform_2, window_bounds = array<i64: 8, 1>}]} {
    %c0 = arith.constant 0 : index
    %c0_0 = arith.constant 0 : index
    %0 = vector.load %arg1[%c0, %c0_0] : memref<8x32xf32, #tpu.memory_space<vmem>>, vector<8x32xf32>
    %c0_1 = arith.constant 0 : index
    %c0_2 = arith.constant 0 : index
    %1 = vector.load %arg2[%c0_1, %c0_2] : memref<8x32xf32, #tpu.memory_space<vmem>>, vector<8x32xf32>
    %2 = arith.mulf %0, %0 : vector<8x32xf32>
    %cst = arith.constant dense<0.000000e+00> : vector<8xf32>
    %3 = vector.multi_reduction <add>, %2, %cst [1] : vector<8x32xf32> to vector<8xf32>
    %4 = vector.shape_cast %3 : vector<8xf32> to vector<8x1xf32>
    %5 = arith.mulf %1, %1 : vector<8x32xf32>
    %cst_3 = arith.constant dense<0.000000e+00> : vector<8xf32>
    %6 = vector.multi_reduction <add>, %5, %cst_3 [1] : vector<8x32xf32> to vector<8xf32>
    %7 = vector.shape_cast %6 : vector<8xf32> to vector<8x1xf32>
    %8 = arith.mulf %0, %1 : vector<8x32xf32>
    %cst_4 = arith.constant dense<0.000000e+00> : vector<8xf32>
    %9 = vector.multi_reduction <add>, %8, %cst_4 [1] : vector<8x32xf32> to vector<8xf32>
    %10 = vector.shape_cast %9 : vector<8xf32> to vector<8x1xf32>
    %cst_5 = arith.constant 1.000000e-24 : f32
    %11 = vector.broadcast %cst_5 : f32 to vector<8x1xf32>
    %12 = arith.maximumf %4, %11 : vector<8x1xf32>
    %13 = math.rsqrt %12 : vector<8x1xf32>
    %cst_6 = arith.constant 1.000000e-24 : f32
    %14 = vector.broadcast %cst_6 : f32 to vector<8x1xf32>
    %15 = arith.maximumf %7, %14 : vector<8x1xf32>
    %16 = math.rsqrt %15 : vector<8x1xf32>
    %17 = arith.mulf %10, %13 : vector<8x1xf32>
    %18 = arith.mulf %17, %16 : vector<8x1xf32>
    %cst_7 = arith.constant 2.000000e+00 : f32
    %19 = vector.broadcast %cst_7 : f32 to vector<8x1xf32>
    %20 = arith.mulf %19, %18 : vector<8x1xf32>
    %cst_8 = arith.constant 2.000000e+00 : f32
    %21 = vector.broadcast %cst_8 : f32 to vector<8x1xf32>
    %22 = arith.subf %21, %20 : vector<8x1xf32>
    %c0_9 = arith.constant 0 : index
    %c0_10 = arith.constant 0 : index
    %23 = vector.load %arg3[%c0_9, %c0_10] : memref<8x1xf32, #tpu.memory_space<vmem>>, vector<8x1xf32>
    tpu.vector_store %arg3[%c0_9, %c0_10], %22 {strides = array<i32>} : memref<8x1xf32, #tpu.memory_space<vmem>>, vector<8x1xf32>,
    return
  }
  func.func @transform_0(%arg0: i32) -> (i32, i32) {
    %c0_i32 = arith.constant 0 : i32
    %c0_i32_0 = arith.constant 0 : i32
    return %arg0, %c0_i32 : i32, i32
  }
  func.func @transform_1(%arg0: i32) -> (i32, i32) {
    %c0_i32 = arith.constant 0 : i32
    %c0_i32_0 = arith.constant 0 : i32
    return %arg0, %c0_i32 : i32, i32
  }
  func.func @transform_2(%arg0: i32) -> (i32, i32) {
    %c0_i32 = arith.constant 0 : i32
    %c0_i32_0 = arith.constant 0 : i32
    return %arg0, %c0_i32 : i32, i32
  }
}

</mosaic_0001>

<bundles_post_ra>
// kernel: tpu_custom_call.1
= control target key start
LH: loop header
LB: loop body
LE: loop exit
PB: predicated region body
PF: predicated region fallthrough
CT: control target
= control target key end

     0   :  { %7 = vsyncpa [#allocation3], 0  ;;  %s164_s0 = inlined_call_operand.hbm [shape: f32[8,32], index: 0, kind: input, shape index: {}]   ;;  %s165_s1 = inlined_call_operand.hbm [shape: f32[8,32], index: 1, kind: input, shape index: {}]   ;;  %s166_s2 = inlined_call_operand.vmem [shape: f32[8,1], index: 2, kind: output, shape index: {}]  }
   0x1   :  { %8 = vsyncpa [#allocation5], 0  ;;  %s120_s9 = smov [#allocation2]   ;;  %s121_s11 = smov [#allocation4]  }
   0x2   :  { %s15_s10 = sshll.u32 %s120_s9, 4  ;;  %s25_s12 = sshll.u32 %s121_s11, 4  ;;  %s16_s10 = int_to_ptr.vmem [resolvable:$true] %s15_s10  ;;  %s26_s12 = int_to_ptr.vmem [resolvable:$true] %s25_s12 }
   0x3   :  { %s72_s15 = scalar_lea.hbm %s164_s0, 128 }
   0x4   :  { %p73_p0 = scmp.ne.s32.totalorder %s164_s0, %s72_s15  ;;  %p76_p1 = scmp.lt.u32.totalorder %s72_s15, %s164_s0 }
   0x6   :  { %p78_p2 = pnand %p76_p1, %p73_p0 }
   0x8   :  { %81 = shalt.err (!%p78_p2)
}
   0x9   :  { %s82_s20 = scalar_lea.vmem %s16_s10, 128  ;;  %p87_p4 = scmp.lt.s32.totalorder %s16_s10, %s16_s10 }
   0xa   :  { %p83_p3 = scmp.ne.s32.totalorder %s16_s10, %s82_s20  ;;  %p88_p5 = scmp.lt.s32.totalorder %s82_s20, %s82_s20 }
   0xc   :  { %p89_p6 = por %p88_p5, %p87_p4 }
   0xe   :  { %p90_p7 = pnand %p89_p6, %p83_p3 }
  0x10   :  { %93 = shalt.err (!%p90_p7)
}
  0x11   :  { %18 = dma.hbm_to_vmem [thread:$0]  %s164_s0, 128, %s16_s10, [#allocation3]  }
  0x12   :  { %s94_s25 = scalar_lea.hbm %s165_s1, 128 }
  0x13   :  { %p95_p8 = scmp.ne.s32.totalorder %s165_s1, %s94_s25  ;;  %p98_p9 = scmp.lt.u32.totalorder %s94_s25, %s165_s1 }
  0x15   :  { %p100_p10 = pnand %p98_p9, %p95_p8 }
  0x17   :  { %103 = shalt.err (!%p100_p10)
}
  0x18   :  { %s104_s30 = scalar_lea.vmem %s26_s12, 128  ;;  %p109_p12 = scmp.lt.s32.totalorder %s26_s12, %s26_s12 }
  0x19   :  { %p105_p11 = scmp.ne.s32.totalorder %s26_s12, %s104_s30  ;;  %p110_p13 = scmp.lt.s32.totalorder %s104_s30, %s104_s30 }
  0x1b   :  { %p111_p0 = por %p110_p13, %p109_p12 }
  0x1d   :  { %p112_p1 = pnand %p111_p0, %p105_p11 }
  0x1f   :  { %115 = shalt.err (!%p112_p1)
}
  0x20   :  { %28 = dma.hbm_to_vmem [thread:$0]  %s165_s1, 128, %s26_s12, [#allocation5]  }
  0x21   :  { %116 = dma.done.wait [#allocation3], 128  }
  0x22   :  { %117 = vsyncadd [#allocation3], 4294967168 }
  0x23   :  { %118 = dma.done.wait [#allocation5], 128  }
  0x24   :  { %119 = vsyncadd [#allocation5], 4294967168  ;;  %v35_v0 = vld [vmem:[#allocation2] sm:$0xff]  ;;  %vm38_vm0 = vcmask 261120   ;;  %v36_v1 = vld [vmem:[#allocation4] sm:$0xff]  ;;  %vm58_vm1 = vcmask 7168  }
  0x25   :  { %v37_v2 = vmul.f32 %v35_v0, %v35_v0  ;;  %v42_v3 = vmul.f32 %v36_v1, %v36_v1  ;;  %v46_v4 = vmul.f32 %v36_v1, %v35_v0 }
  0x27   :  { %v39_v5 = vsel %vm38_vm0, %v37_v2, 0.0  ;;  %v47_v6 = vsel %vm38_vm0, %v46_v4, 0.0  ;;  %v43_v7 = vsel %vm38_vm0, %v42_v3, 0.0 }
  0x28   :  { %40 = vadd.xlane.f32.xlu0 %v39_v5  ;;  %48 = vadd.xlane.f32.xlu1 %v47_v6 }
  0x2c   :  { %44 = vadd.xlane.f32.xlu0 %v43_v7 }
  0xb5   :  { %v41_v8 = vpop.xlane.xlu0 %40  ;;  %v49_v13 = vpop.xlane.xlu1 %48 }
  0xb6   :  { %v50_v9 = vmax.f32 %v41_v8, 1e-24 }
  0xb8   :  { %68 = vrsqrt.f32 %v50_v9 }
  0xb9   :  { %v45_v10 = vpop.xlane.xlu0 %44 }
  0xba   :  { %v52_v11 = vmax.f32 %v45_v10, 1e-24 }
  0xbc   :  { %70 = vrsqrt.f32 %v52_v11 }
  0xc2   :  { %v69_v12 = vpop.eup %68 }
  0xc3   :  { %v54_v14 = vmul.f32 %v69_v12, %v49_v13 }
  0xc6   :  { %v71_v15 = vpop.eup %70 }
  0xc7   :  { %v55_v16 = vmul.f32 %v71_v15, %v54_v14 }
  0xc9   :  { %v56_v17 = vmul.f32 2.0, %v55_v16 }
  0xcb   :  { %v57_v18 = vsub.f32 2.0, %v56_v17 }
  0xcd   :  { %59 = vst.msk [vmem:[%s166_s2] sm:$0xff] %vm58_vm1, %v57_v18 }
  0xce   :  { %64 = vsyncpa [#allocation3], 1 }
  0xcf   :  { %65 = vsyncpa [#allocation5], 1 }

</bundles_post_ra>
